<compile_context>
chip_gen: v7x
topology: tpu7x:2x2x1
jax: 0.10.0
libtpu: 0.0.40
codegen_flags: <defaults>
</compile_context>

<pallas_src>
import jax
import jax.numpy as jnp
from jax.experimental import pallas as pl
from jax.experimental.pallas import tpu as pltpu

IN_FEATURES = 7
OUT_FEATURES = 2


def _round_up(n: int, m: int) -> int:
    return ((n + m - 1) // m) * m


def anno_subnet_kernel(x_ref, wt_ref, b_ref, o_ref):
    """One batch tile: relu(x @ W.T + b).

    x_ref:  (TB, 7) f32 VMEM  -- rows of x exactly as laid out in HBM
    wt_ref: (7, 2)  f32 VMEM  -- W transposed once at trace time (tiny)
    b_ref:  (1, 2)  f32 VMEM
    o_ref:  (TB, 2) f32 VMEM
    """
    y = jnp.dot(x_ref[...], wt_ref[...], preferred_element_type=jnp.float32)
    o_ref[...] = jnp.maximum(y + b_ref[...], 0.0)


def anno_subnet_forward(x, w, b, *, min_pallas_batch=2048, max_tile_b=4096):
    """relu(flatten(x, 1) @ w.T + b).

    x: (B, ...) with prod(trailing dims) == 7
    w: (2, 7) PyTorch-layout weight
    b: (2,)   bias
    returns (B, 2) float32
    """
    B = x.shape[0]
    x2 = x.reshape(B, -1)
    assert x2.shape[1] == IN_FEATURES, (
        f"expected {IN_FEATURES} features after flatten, got {x2.shape[1]}")
    x2 = x2.astype(jnp.float32)
    w = w.astype(jnp.float32)
    b = b.astype(jnp.float32)

    if B < min_pallas_batch:
        # Small batch: one fused XLA pass beats pallas_call launch overhead
        # for ~28 FLOPs/row of purely memory-bound work.
        return jnp.maximum(x2 @ w.T + b[None, :], 0.0)

    # Tile the batch so the grid has >= ~4 steps (megacore sharding on v7x,
    # DMA/compute overlap everywhere).  TB is a multiple of 128 and capped so
    # lane-padded (TB, 128)-word blocks stay ~2 MiB per buffer in VMEM.
    tb = _round_up(pl.cdiv(B, 4), 128)
    tb = max(256, min(tb, max_tile_b))
    grid = (pl.cdiv(B, tb),)          # last block may be partial; Pallas masks it

    wt = w.T                          # (7, 2) -- tiny one-time relayout
    b2 = b.reshape(1, OUT_FEATURES)   # (1, 2)

    return pl.pallas_call(
        anno_subnet_kernel,
        out_shape=jax.ShapeDtypeStruct((B, OUT_FEATURES), jnp.float32),
        grid=grid,
        in_specs=[
            pl.BlockSpec((tb, IN_FEATURES), lambda i: (i, 0)),            # x rows
            pl.BlockSpec((IN_FEATURES, OUT_FEATURES), lambda i: (0, 0)),  # W^T
            pl.BlockSpec((1, OUT_FEATURES), lambda i: (0, 0)),            # bias
        ],
        out_specs=pl.BlockSpec((tb, OUT_FEATURES), lambda i: (i, 0)),
        compiler_params=pltpu.CompilerParams(
            dimension_semantics=("parallel",)),
        cost_estimate=pl.CostEstimate(
            flops=2 * B * IN_FEATURES * OUT_FEATURES,
            transcendentals=0,
            bytes_accessed=4 * B * (IN_FEATURES + OUT_FEATURES)),
    )(x2, wt, b2)


def init_params(key):
    """Deterministic init mimicking nn.Linear(7, 2) default (uniform +-1/sqrt(fan_in))."""
    kw, kb = jax.random.split(key)
    bound = 1.0 / jnp.sqrt(jnp.float32(IN_FEATURES))
    w = jax.random.uniform(kw, (OUT_FEATURES, IN_FEATURES), jnp.float32, -bound, bound)
    b = jax.random.uniform(kb, (OUT_FEATURES,), jnp.float32, -bound, bound)
    return w, b                                      # (2, 7), (2,)


def _ref(x, w, b):
    x2 = x.reshape(x.shape[0], -1).astype(jnp.float32)
    return jnp.maximum(x2 @ w.T + b[None, :], 0.0)


if __name__ == "__main__":
    key = jax.random.PRNGKey(0)
    k_x, k_x2, k_x3, k_p = jax.random.split(key, 4)
    w, b = init_params(k_p)

    # 1) Pallas path, batch divisible by the tile (grid = 4, TB = 256).
    B = 1024
    x = jax.random.normal(k_x, (B, IN_FEATURES), jnp.float32)
    out = jax.block_until_ready(
        anno_subnet_forward(x, w, b, min_pallas_batch=0))
    assert out.shape == (B, OUT_FEATURES)
    assert jnp.allclose(out, _ref(x, w, b), atol=1e-5, rtol=1e-5), "mismatch (B=1024)"

    # 2) Pallas path, ragged batch exercising the masked last block.
    B2 = 900
    xr = jax.random.normal(k_x2, (B2, IN_FEATURES), jnp.float32)
    out2 = jax.block_until_ready(
        anno_subnet_forward(xr, w, b, min_pallas_batch=0))
    assert out2.shape == (B2, OUT_FEATURES)
    assert jnp.allclose(out2, _ref(xr, w, b), atol=1e-5, rtol=1e-5), "mismatch (B=900)"

    # 3) Small batch: fused-XLA fallback (default min_pallas_batch).
    B3 = 6
    xs = jax.random.normal(k_x3, (B3, IN_FEATURES), jnp.float32)
    out3 = jax.block_until_ready(anno_subnet_forward(xs, w, b))
    assert out3.shape == (B3, OUT_FEATURES)
    assert jnp.allclose(out3, _ref(xs, w, b), atol=1e-5, rtol=1e-5), "mismatch (B=6)"

    print("KERNEL_OK")
</pallas_src>

<mosaic_0001>
module attributes {stable_mosaic.version = 11 : i64} {
  func.func @anno_subnet_kernel(%arg0: i32, %arg1: memref<256x7xf32, #tpu.memory_space<vmem>>, %arg2: memref<7x2xf32, #tpu.memory_space<vmem>>, %arg3: memref<1x2xf32, #tpu.memory_space<vmem>>, %arg4: memref<256x2xf32, #tpu.memory_space<vmem>>) attributes {dimension_semantics = [#tpu.dimension_semantics<parallel>], iteration_bounds = array<i64: 4>, scalar_prefetch = 0 : i64, scratch_operands = 0 : i64, tpu.core_type = #tpu.core_type<tc>, window_params = [{transform_indices = @transform_0, window_bounds = array<i64: 256, 7>}, {pipeline_mode = #tpu.pipeline_mode<synchronous>, transform_indices = @transform_1, window_bounds = array<i64: 7, 2>}, {pipeline_mode = #tpu.pipeline_mode<synchronous>, transform_indices = @transform_2, window_bounds = array<i64: 1, 2>}, {transform_indices = @transform_3, window_bounds = array<i64: 256, 2>}]} {
    %c0 = arith.constant 0 : index
    %c0_0 = arith.constant 0 : index
    %0 = vector.load %arg1[%c0, %c0_0] : memref<256x7xf32, #tpu.memory_space<vmem>>, vector<256x7xf32>
    %c0_1 = arith.constant 0 : index
    %c0_2 = arith.constant 0 : index
    %1 = vector.load %arg2[%c0_1, %c0_2] : memref<7x2xf32, #tpu.memory_space<vmem>>, vector<7x2xf32>
    %cst = arith.constant dense<0.000000e+00> : vector<256x2xf32>
    %2 = tpu.matmul %0, %1, %cst {dimension_numbers = #tpu.dot_dimension_numbers<[1], [0], [0], [1], [0, 0, 1, 1], [], []>} : vector<256x7xf32>, vector<7x2xf32>, vector<256x2xf32> -> vector<256x2xf32>
    %c0_3 = arith.constant 0 : index
    %c0_4 = arith.constant 0 : index
    %3 = vector.load %arg3[%c0_3, %c0_4] : memref<1x2xf32, #tpu.memory_space<vmem>>, vector<1x2xf32>
    %4 = vector.broadcast %3 : vector<1x2xf32> to vector<256x2xf32>
    %5 = arith.addf %2, %4 : vector<256x2xf32>
    %cst_5 = arith.constant 0.000000e+00 : f32
    %6 = vector.broadcast %cst_5 : f32 to vector<256x2xf32>
    %7 = arith.maximumf %5, %6 : vector<256x2xf32>
    %c0_6 = arith.constant 0 : index
    %c0_7 = arith.constant 0 : index
    %8 = vector.load %arg4[%c0_6, %c0_7] : memref<256x2xf32, #tpu.memory_space<vmem>>, vector<256x2xf32>
    tpu.vector_store %arg4[%c0_6, %c0_7], %7 {strides = array<i32>} : memref<256x2xf32, #tpu.memory_space<vmem>>, vector<256x2xf32>,
    return
  }
  func.func @transform_0(%arg0: i32) -> (i32, i32) {
    %c0_i32 = arith.constant 0 : i32
    %c0_i32_0 = arith.constant 0 : i32
    return %arg0, %c0_i32 : i32, i32
  }
  func.func @transform_1(%arg0: i32) -> (i32, i32) {
    %c0_i32 = arith.constant 0 : i32
    %c0_i32_0 = arith.constant 0 : i32
    %c0_i32_1 = arith.constant 0 : i32
    return %c0_i32, %c0_i32_0 : i32, i32
  }
  func.func @transform_2(%arg0: i32) -> (i32, i32) {
    %c0_i32 = arith.constant 0 : i32
    %c0_i32_0 = arith.constant 0 : i32
    %c0_i32_1 = arith.constant 0 : i32
    return %c0_i32, %c0_i32_0 : i32, i32
  }
  func.func @transform_3(%arg0: i32) -> (i32, i32) {
    %c0_i32 = arith.constant 0 : i32
    %c0_i32_0 = arith.constant 0 : i32
    return %arg0, %c0_i32 : i32, i32
  }
}

</mosaic_0001>

<bundles_post_ra>
// kernel: tpu_custom_call.1
= control target key start
LH: loop header
LB: loop body
LE: loop exit
PB: predicated region body
PF: predicated region fallthrough
CT: control target
= control target key end

     0   :  { %s827_s12 = smov 0   ;;  %s1023_s0 = inlined_call_operand.vmem [shape: f32[1024,7], index: 0, kind: input, shape index: {}]   ;;  %s1024_s1 = inlined_call_operand.vmem [shape: f32[7,2], index: 1, kind: input, shape index: {}]   ;;  %s1025_s2 = inlined_call_operand.vmem [shape: f32[1,2], index: 2, kind: input, shape index: {}]   ;;  %s1026_s3 = inlined_call_operand.vmem [shape: f32[1024,2], index: 3, kind: output, shape index: {}]  }
   0x1 LB: > { %s661_s13 = sadd.s32 4294967295, %s805_s12   ;;  %p665_p0 = scmp.ge.s32.totalorder %s805_s12, 1  ;;  %s805_s12 = sphi %s827_s12, %s13_s12  }
   0x2   : > { %p138_p1 = scmp.lt.s32.totalorder %s805_s12, 5 }
   0x4   : > { %p139_p2 = pnand %p665_p0, %p138_p1 }
   0x5   : > { %v206_v0 = vld [vmem:[%s1024_s1] sm:$0x7f] (!%p139_p2)  ;;  %vm311_vm0 = vcmask (!%p139_p2), 1046528   ;;  %s666_s16 = sshll.u32 (!%p139_p2), %s661_s13, 5  ;;  %vm214_vm1 = vcmask (!%p139_p2), 56320   ;;  %vm572_vm2 = vcmask (!%p139_p2), 15360  }
   0x6   : > { %142 = sbr.rel (%p139_p2) target bundleno = 265 (0x109), region = 32  ;;  %739 = vmatprep.subr.msk.mxu0 (!%p139_p2), %vm311_vm0, %v206_v0  ;;  %789 = vmatprep.subr.msk.mxu1 (!%p139_p2), %vm311_vm0, %v206_v0  ;;  %p163_p3 = scmp.lt.s32.totalorder (!%p139_p2), %s666_s16, 127  ;;  %v915_v33 = vld [vmem:[%s1025_s2] ss:$0 sm:$0xff] (!%p139_p2) }
   0x7   : > { %740 = vmatpush3.msk.msra.mxu0 (!%p139_p2), %vm311_vm0, %v206_v0  ;;  %790 = vmatpush3.msk.msra.mxu1 (!%p139_p2), %vm311_vm0, %v206_v0 }
   0xd   : > { %s1028_s16 = smov (!%p163_p3, %s666_s16), 127 }
   0xe   : > { %s667_s17 = sshll.u32 %s1028_s16, 3 }
   0xf   : > { %s846_s20 = scalar_lea.vmem %s1023_s0, %s667_s17  ;;  %s924_s25 = scalar_lea.vmem %s1026_s3, %s667_s17 }
  0x10   : > { %v174_v1 = vld [vmem:[%s846_s20] sm:$0xff]  ;;  %v175_v3 = vld [vmem:[%s846_s20 + $0x8] sm:$0xff]  ;;  %v176_v5 = vld [vmem:[%s846_s20 + $0x10] sm:$0xff] }
  0x11   : > { %v190_v2 = vld [vmem:[%s846_s20 + $0x80] sm:$0xff]  ;;  %741 = vmatprep.mubr.msk.f32.mxu0 %vm214_vm1, %v174_v1  ;;  %v191_v4 = vld [vmem:[%s846_s20 + $0x88] sm:$0xff]  ;;  %v192_v6 = vld [vmem:[%s846_s20 + $0x90] sm:$0xff] }
  0x12   : > { %765 = vmatprep.mubr.msk.f32.mxu1 %vm214_vm1, %v190_v2  ;;  %742 = vmatmul.mubr.msk.f32.vlgmr.msra.gmra.mrb[0].mxu0 %vm214_vm1, %v175_v3  ;;  %v177_v7 = vld [vmem:[%s846_s20 + $0x18] sm:$0xff]  ;;  %v178_v9 = vld [vmem:[%s846_s20 + $0x20] sm:$0xff]  ;;  %v179_v11 = vld [vmem:[%s846_s20 + $0x28] sm:$0xff] }
  0x13   : > { %766 = vmatmul.mubr.msk.f32.vlgmr.msra.gmra.mrb[0].mxu1 %vm214_vm1, %v191_v4  ;;  %744 = vmatprep.mubr.msk.f32.mxu0 %vm214_vm1, %v176_v5  ;;  %v193_v8 = vld [vmem:[%s846_s20 + $0x98] sm:$0xff]  ;;  %v194_v10 = vld [vmem:[%s846_s20 + $0xa0] sm:$0xff]  ;;  %v195_v12 = vld [vmem:[%s846_s20 + $0xa8] sm:$0xff] }
  0x14   : > { %768 = vmatprep.mubr.msk.f32.mxu1 %vm214_vm1, %v192_v6  ;;  %v180_v13 = vld [vmem:[%s846_s20 + $0x30] sm:$0xff]  ;;  %v181_v15 = vld [vmem:[%s846_s20 + $0x38] sm:$0xff]  ;;  %v182_v17 = vld [vmem:[%s846_s20 + $0x40] sm:$0xff] }
  0x15   : > { %v196_v14 = vld [vmem:[%s846_s20 + $0xb0] sm:$0xff]  ;;  %v197_v16 = vld [vmem:[%s846_s20 + $0xb8] sm:$0xff]  ;;  %v198_v18 = vld [vmem:[%s846_s20 + $0xc0] sm:$0xff] }
  0x16   : > { %745 = vmatmul.mubr.msk.f32.gmra.mrb[2].mxu0 %vm214_vm1, %v177_v7  ;;  %v183_v19 = vld [vmem:[%s846_s20 + $0x48] sm:$0xff]  ;;  %v184_v21 = vld [vmem:[%s846_s20 + $0x50] sm:$0xff]  ;;  %v185_v23 = vld [vmem:[%s846_s20 + $0x58] sm:$0xff] }
  0x17   : > { %769 = vmatmul.mubr.msk.f32.gmra.mrb[2].mxu1 %vm214_vm1, %v193_v8  ;;  %747 = vmatprep.mubr.msk.f32.mxu0 %vm214_vm1, %v178_v9  ;;  %v199_v20 = vld [vmem:[%s846_s20 + $0xc8] sm:$0xff]  ;;  %v200_v22 = vld [vmem:[%s846_s20 + $0xd0] sm:$0xff]  ;;  %v201_v24 = vld [vmem:[%s846_s20 + $0xd8] sm:$0xff] }
  0x18   : > { %771 = vmatprep.mubr.msk.f32.mxu1 %vm214_vm1, %v194_v10  ;;  %v186_v25 = vld [vmem:[%s846_s20 + $0x60] sm:$0xff]  ;;  %v187_v27 = vld [vmem:[%s846_s20 + $0x68] sm:$0xff]  ;;  %v188_v29 = vld [vmem:[%s846_s20 + $0x70] sm:$0xff] }
  0x19   : > { %v202_v26 = vld [vmem:[%s846_s20 + $0xe0] sm:$0xff]  ;;  %v203_v28 = vld [vmem:[%s846_s20 + $0xe8] sm:$0xff]  ;;  %v204_v30 = vld [vmem:[%s846_s20 + $0xf0] sm:$0xff] }
  0x1a   : > { %748 = vmatmul.mubr.msk.f32.gmra.mrb[4].mxu0 %vm214_vm1, %v179_v11  ;;  %v189_v31 = vld [vmem:[%s846_s20 + $0x78] sm:$0xff] }
  0x1b   : > { %772 = vmatmul.mubr.msk.f32.gmra.mrb[4].mxu1 %vm214_vm1, %v195_v12  ;;  %750 = vmatprep.mubr.msk.f32.mxu0 %vm214_vm1, %v180_v13  ;;  %v205_v32 = vld [vmem:[%s846_s20 + $0xf8] sm:$0xff] }
  0x1c   : > { %774 = vmatprep.mubr.msk.f32.mxu1 %vm214_vm1, %v196_v14 }
  0x1e   : > { %751 = vmatmul.mubr.msk.f32.gmra.mrb[6].mxu0 %vm214_vm1, %v181_v15 }
  0x1f   : > { %775 = vmatmul.mubr.msk.f32.gmra.mrb[6].mxu1 %vm214_vm1, %v197_v16  ;;  %753 = vmatprep.mubr.msk.f32.mxu0 %vm214_vm1, %v182_v17 }
  0x20   : > { %777 = vmatprep.mubr.msk.f32.mxu1 %vm214_vm1, %v198_v18 }
  0x22   : > { %754 = vmatmul.mubr.msk.f32.gmra.mrb[8].mxu0 %vm214_vm1, %v183_v19 }
  0x23   : > { %778 = vmatmul.mubr.msk.f32.gmra.mrb[8].mxu1 %vm214_vm1, %v199_v20  ;;  %756 = vmatprep.mubr.msk.f32.mxu0 %vm214_vm1, %v184_v21 }
  0x24   : > { %780 = vmatprep.mubr.msk.f32.mxu1 %vm214_vm1, %v200_v22 }
  0x26   : > { %757 = vmatmul.mubr.msk.f32.gmra.mrb[10].mxu0 %vm214_vm1, %v185_v23 }
  0x27   : > { %781 = vmatmul.mubr.msk.f32.gmra.mrb[10].mxu1 %vm214_vm1, %v201_v24  ;;  %759 = vmatprep.mubr.msk.f32.mxu0 %vm214_vm1, %v186_v25 }
  0x28   : > { %783 = vmatprep.mubr.msk.f32.mxu1 %vm214_vm1, %v202_v26 }
  0x2a   : > { %760 = vmatmul.mubr.msk.f32.gmra.mrb[12].mxu0 %vm214_vm1, %v187_v27 }
  0x2b   : > { %784 = vmatmul.mubr.msk.f32.gmra.mrb[12].mxu1 %vm214_vm1, %v203_v28  ;;  %762 = vmatprep.mubr.msk.f32.mxu0 %vm214_vm1, %v188_v29 }
  0x2c   : > { %786 = vmatprep.mubr.msk.f32.mxu1 %vm214_vm1, %v204_v30 }
  0x2e   : > { %763 = vmatmul.mubr.msk.f32.gmra.mrb[14].mxu0 %vm214_vm1, %v189_v31 }
  0x2f   : > { %787 = vmatmul.mubr.msk.f32.gmra.mrb[14].mxu1 %vm214_vm1, %v205_v32 }
  0xe5   : > { %v743_v34 = vpop.f32.mrb[0].mxu0 }
  0xe6   : > { %v767_v35 = vpop.f32.mrb[0].mxu1  ;;  %v387_v36 = vadd.f32 %v743_v34, %v915_v33  ;;  %v381_v38 = vpop.f32.mrb[1].mxu0 }
  0xe7   : > { %v467_v37 = vadd.f32 %v767_v35, %v915_v33  ;;  %v461_v39 = vpop.f32.mrb[1].mxu1  ;;  %v382_v40 = vadd.f32 %v915_v33, %v381_v38 }
  0xe8   : > { %v462_v41 = vadd.f32 %v915_v33, %v461_v39  ;;  %v541_v42 = vmax.f32 %v387_v36, 0.0 }
  0xe9   : > { %v557_v43 = vmax.f32 %v467_v37, 0.0  ;;  %v540_v44 = vmax.f32 %v382_v40, 0.0  ;;  %v746_v46 = vpop.f32.mrb[2].mxu0 }
  0xea   : > { %v556_v45 = vmax.f32 %v462_v41, 0.0  ;;  %v770_v47 = vpop.f32.mrb[2].mxu1  ;;  %574 = vst.msk [vmem:[%s924_s25 + $0x8] sm:$0xff] %vm572_vm2, %v541_v42  ;;  %v397_v48 = vadd.f32 %v746_v46, %v915_v33  ;;  %v391_v50 = vpop.f32.mrb[3].mxu0 }
  0xeb   : > { %590 = vst.msk [vmem:[%s924_s25 + $0x88] sm:$0xff] %vm572_vm2, %v557_v43  ;;  %v477_v49 = vadd.f32 %v770_v47, %v915_v33  ;;  %v471_v51 = vpop.f32.mrb[3].mxu1  ;;  %573 = vst.msk [vmem:[%s924_s25] sm:$0xff] %vm572_vm2, %v540_v44  ;;  %v392_v52 = vadd.f32 %v915_v33, %v391_v50 }
  0xec   : > { %589 = vst.msk [vmem:[%s924_s25 + $0x80] sm:$0xff] %vm572_vm2, %v556_v45  ;;  %v472_v53 = vadd.f32 %v915_v33, %v471_v51  ;;  %v543_v54 = vmax.f32 %v397_v48, 0.0 }
  0xed   : > { %v559_v55 = vmax.f32 %v477_v49, 0.0  ;;  %v542_v56 = vmax.f32 %v392_v52, 0.0  ;;  %v749_v58 = vpop.f32.mrb[4].mxu0 }
  0xee   : > { %v558_v57 = vmax.f32 %v472_v53, 0.0  ;;  %v773_v59 = vpop.f32.mrb[4].mxu1  ;;  %576 = vst.msk [vmem:[%s924_s25 + $0x18] sm:$0xff] %vm572_vm2, %v543_v54  ;;  %v407_v60 = vadd.f32 %v749_v58, %v915_v33  ;;  %v401_v62 = vpop.f32.mrb[5].mxu0 }
  0xef   : > { %592 = vst.msk [vmem:[%s924_s25 + $0x98] sm:$0xff] %vm572_vm2, %v559_v55  ;;  %v487_v61 = vadd.f32 %v773_v59, %v915_v33  ;;  %v481_v63 = vpop.f32.mrb[5].mxu1  ;;  %575 = vst.msk [vmem:[%s924_s25 + $0x10] sm:$0xff] %vm572_vm2, %v542_v56  ;;  %v402_v0 = vadd.f32 %v915_v33, %v401_v62 }
  0xf0   : > { %591 = vst.msk [vmem:[%s924_s25 + $0x90] sm:$0xff] %vm572_vm2, %v558_v57  ;;  %v482_v1 = vadd.f32 %v915_v33, %v481_v63  ;;  %v545_v2 = vmax.f32 %v407_v60, 0.0 }
  0xf1   : > { %v561_v3 = vmax.f32 %v487_v61, 0.0  ;;  %v544_v4 = vmax.f32 %v402_v0, 0.0  ;;  %v752_v6 = vpop.f32.mrb[6].mxu0 }
  0xf2   : > { %v560_v5 = vmax.f32 %v482_v1, 0.0  ;;  %v776_v7 = vpop.f32.mrb[6].mxu1  ;;  %578 = vst.msk [vmem:[%s924_s25 + $0x28] sm:$0xff] %vm572_vm2, %v545_v2  ;;  %v417_v8 = vadd.f32 %v752_v6, %v915_v33  ;;  %v411_v10 = vpop.f32.mrb[7].mxu0 }
  0xf3   : > { %594 = vst.msk [vmem:[%s924_s25 + $0xa8] sm:$0xff] %vm572_vm2, %v561_v3  ;;  %v497_v9 = vadd.f32 %v776_v7, %v915_v33  ;;  %v491_v11 = vpop.f32.mrb[7].mxu1  ;;  %577 = vst.msk [vmem:[%s924_s25 + $0x20] sm:$0xff] %vm572_vm2, %v544_v4  ;;  %v412_v12 = vadd.f32 %v915_v33, %v411_v10 }
  0xf4   : > { %593 = vst.msk [vmem:[%s924_s25 + $0xa0] sm:$0xff] %vm572_vm2, %v560_v5  ;;  %v492_v13 = vadd.f32 %v915_v33, %v491_v11  ;;  %v547_v14 = vmax.f32 %v417_v8, 0.0 }
  0xf5   : > { %v563_v15 = vmax.f32 %v497_v9, 0.0  ;;  %v546_v16 = vmax.f32 %v412_v12, 0.0  ;;  %v755_v18 = vpop.f32.mrb[8].mxu0 }
  0xf6   : > { %v562_v17 = vmax.f32 %v492_v13, 0.0  ;;  %v779_v19 = vpop.f32.mrb[8].mxu1  ;;  %580 = vst.msk [vmem:[%s924_s25 + $0x38] sm:$0xff] %vm572_vm2, %v547_v14  ;;  %v427_v20 = vadd.f32 %v755_v18, %v915_v33  ;;  %v421_v22 = vpop.f32.mrb[9].mxu0 }
  0xf7   : > { %596 = vst.msk [vmem:[%s924_s25 + $0xb8] sm:$0xff] %vm572_vm2, %v563_v15  ;;  %v507_v21 = vadd.f32 %v779_v19, %v915_v33  ;;  %v501_v23 = vpop.f32.mrb[9].mxu1  ;;  %579 = vst.msk [vmem:[%s924_s25 + $0x30] sm:$0xff] %vm572_vm2, %v546_v16  ;;  %v422_v24 = vadd.f32 %v915_v33, %v421_v22 }
  0xf8   : > { %595 = vst.msk [vmem:[%s924_s25 + $0xb0] sm:$0xff] %vm572_vm2, %v562_v17  ;;  %v502_v25 = vadd.f32 %v915_v33, %v501_v23  ;;  %v549_v26 = vmax.f32 %v427_v20, 0.0 }
  0xf9   : > { %v565_v27 = vmax.f32 %v507_v21, 0.0  ;;  %v548_v28 = vmax.f32 %v422_v24, 0.0  ;;  %v758_v30 = vpop.f32.mrb[10].mxu0 }
  0xfa   : > { %v564_v29 = vmax.f32 %v502_v25, 0.0  ;;  %v782_v31 = vpop.f32.mrb[10].mxu1  ;;  %582 = vst.msk [vmem:[%s924_s25 + $0x48] sm:$0xff] %vm572_vm2, %v549_v26  ;;  %v437_v32 = vadd.f32 %v758_v30, %v915_v33  ;;  %v431_v35 = vpop.f32.mrb[11].mxu0 }
  0xfb   : > { %598 = vst.msk [vmem:[%s924_s25 + $0xc8] sm:$0xff] %vm572_vm2, %v565_v27  ;;  %v517_v34 = vadd.f32 %v782_v31, %v915_v33  ;;  %v511_v36 = vpop.f32.mrb[11].mxu1  ;;  %581 = vst.msk [vmem:[%s924_s25 + $0x40] sm:$0xff] %vm572_vm2, %v548_v28  ;;  %v432_v37 = vadd.f32 %v915_v33, %v431_v35 }
  0xfc   : > { %597 = vst.msk [vmem:[%s924_s25 + $0xc0] sm:$0xff] %vm572_vm2, %v564_v29  ;;  %v512_v38 = vadd.f32 %v915_v33, %v511_v36  ;;  %v551_v39 = vmax.f32 %v437_v32, 0.0 }
  0xfd   : > { %v567_v40 = vmax.f32 %v517_v34, 0.0  ;;  %v550_v41 = vmax.f32 %v432_v37, 0.0  ;;  %v761_v43 = vpop.f32.mrb[12].mxu0 }
  0xfe   : > { %v566_v42 = vmax.f32 %v512_v38, 0.0  ;;  %v785_v44 = vpop.f32.mrb[12].mxu1  ;;  %584 = vst.msk [vmem:[%s924_s25 + $0x58] sm:$0xff] %vm572_vm2, %v551_v39  ;;  %v447_v45 = vadd.f32 %v761_v43, %v915_v33  ;;  %v441_v47 = vpop.f32.mrb[13].mxu0 }
  0xff   : > { %600 = vst.msk [vmem:[%s924_s25 + $0xd8] sm:$0xff] %vm572_vm2, %v567_v40  ;;  %v527_v46 = vadd.f32 %v785_v44, %v915_v33  ;;  %v521_v48 = vpop.f32.mrb[13].mxu1  ;;  %583 = vst.msk [vmem:[%s924_s25 + $0x50] sm:$0xff] %vm572_vm2, %v550_v41  ;;  %v442_v49 = vadd.f32 %v915_v33, %v441_v47 }
 0x100   : > { %599 = vst.msk [vmem:[%s924_s25 + $0xd0] sm:$0xff] %vm572_vm2, %v566_v42  ;;  %v522_v50 = vadd.f32 %v915_v33, %v521_v48  ;;  %v553_v51 = vmax.f32 %v447_v45, 0.0 }
 0x101   : > { %v569_v52 = vmax.f32 %v527_v46, 0.0  ;;  %v552_v53 = vmax.f32 %v442_v49, 0.0  ;;  %v764_v55 = vpop.f32.mrb[14].mxu0 }
 0x102   : > { %v568_v54 = vmax.f32 %v522_v50, 0.0  ;;  %v788_v56 = vpop.f32.mrb[14].mxu1  ;;  %586 = vst.msk [vmem:[%s924_s25 + $0x68] sm:$0xff] %vm572_vm2, %v553_v51  ;;  %v457_v57 = vadd.f32 %v764_v55, %v915_v33  ;;  %v451_v59 = vpop.f32.mrb[15].mxu0 }
 0x103   : > { %602 = vst.msk [vmem:[%s924_s25 + $0xe8] sm:$0xff] %vm572_vm2, %v569_v52  ;;  %v537_v58 = vadd.f32 %v788_v56, %v915_v33  ;;  %v531_v60 = vpop.f32.mrb[15].mxu1  ;;  %585 = vst.msk [vmem:[%s924_s25 + $0x60] sm:$0xff] %vm572_vm2, %v552_v53  ;;  %v452_v61 = vadd.f32 %v915_v33, %v451_v59 }
 0x104   : > { %601 = vst.msk [vmem:[%s924_s25 + $0xe0] sm:$0xff] %vm572_vm2, %v568_v54  ;;  %v532_v62 = vadd.f32 %v915_v33, %v531_v60  ;;  %v555_v63 = vmax.f32 %v457_v57, 0.0 }
 0x105   : > { %v571_v0 = vmax.f32 %v537_v58, 0.0  ;;  %v554_v1 = vmax.f32 %v452_v61, 0.0 }
 0x106   : > { %v570_v2 = vmax.f32 %v532_v62, 0.0  ;;  %588 = vst.msk [vmem:[%s924_s25 + $0x78] sm:$0xff] %vm572_vm2, %v555_v63 }
 0x107   : > { %604 = vst.msk [vmem:[%s924_s25 + $0xf8] sm:$0xff] %vm572_vm2, %v571_v0  ;;  %587 = vst.msk [vmem:[%s924_s25 + $0x70] sm:$0xff] %vm572_vm2, %v554_v1 }
 0x108   : > { %603 = vst.msk [vmem:[%s924_s25 + $0xf0] sm:$0xff] %vm572_vm2, %v570_v2 }
 0x109 PF: > { %s13_s12 = sadd.s32 1, %s805_s12  }
 0x10a   : > { %p10_p4 = scmp.ge.s32.totalorder %s13_s12, 6  }
 0x10c   :  { %12 = sbr.rel (!%p10_p4) target bundleno = 1 (0x1), region = 62 }

</bundles_post_ra>
